<compile_context>
chip_gen: v7x
topology: tpu7x:2x2x1
jax: 0.10.0
libtpu: 0.0.40
codegen_flags: <defaults>
</compile_context>

<pallas_src>
import functools

import jax
import jax.numpy as jnp
from jax.experimental import pallas as pl
from jax.experimental.pallas import tpu as pltpu

_SQRT_2_OVER_PI = 0.7978845608028654
_GELU_TANH_C = 0.044715
_INV_SQRT2 = 0.7071067811865476


def _round_up(n, m):
    return ((n + m - 1) // m) * m


def _gelu_tanh(x):
    # tanh-approx GELU: the transcendental (tanh) issues on the EUP slot, only
    # a handful of VALU ops remain -> MXU-bound again on v6e/v7x.
    inner = _SQRT_2_OVER_PI * (x + _GELU_TANH_C * x * x * x)
    return 0.5 * x * (1.0 + jnp.tanh(inner))


def _gelu_erf(x):
    # Exact erf formulation (bit-matches PyTorch nn.GELU() default); VALU-heavy.
    return 0.5 * x * (1.0 + jax.lax.erf(x * _INV_SQRT2))


def _dino_head_kernel(x_ref, w1_ref, b1_ref, w2_ref, b2_ref, w3_ref, b3_ref,
                      o_ref, *, gelu_fn):
    # bf16 operands feed the MXU with f32 accumulation; bias + GELU stay in f32
    # on the VPU (portable to v5e, which has no bf16 VPU).
    h = jnp.dot(x_ref[...], w1_ref[...], preferred_element_type=jnp.float32)
    h = gelu_fn(h + b1_ref[...]).astype(jnp.bfloat16)
    h = jnp.dot(h, w2_ref[...], preferred_element_type=jnp.float32)
    h = gelu_fn(h + b2_ref[...]).astype(jnp.bfloat16)
    h = jnp.dot(h, w3_ref[...], preferred_element_type=jnp.float32)
    o_ref[...] = (h + b3_ref[...]).astype(o_ref.dtype)


def _device_vmem_capacity():
    try:
        return int(pltpu.get_tpu_info().vmem_capacity_bytes)
    except Exception:
        return 64 * 1024 * 1024  # conservative fallback: v7x per-TensorCore VMEM


def _vmem_estimate(block_m, in_dim, hidden, bottleneck, out_bytes, weight_bufs):
    weights = 2 * (in_dim * hidden + hidden * hidden + hidden * bottleneck)  # bf16
    biases = 4 * (2 * hidden + bottleneck)                                   # f32
    x_tiles = 2 * block_m * in_dim * 2            # double-buffered bf16 x tiles
    o_tiles = 2 * block_m * bottleneck * out_bytes
    act = 3 * block_m * hidden * 4                # live f32/bf16 activation slabs
    return weight_bufs * (weights + biases) + x_tiles + o_tiles + act


def _build_call(n, block_m, in_dim, hidden, bottleneck, out_dtype, gelu_fn,
                single_buffer_weights, vmem_cap):
    if single_buffer_weights:
        def resident(shape):
            return pl.BlockSpec(shape, lambda i: (0, 0),
                                pipeline_mode=pl.Buffered(1))
        wbuf = 1
    else:
        def resident(shape):
            return pl.BlockSpec(shape, lambda i: (0, 0))
        wbuf = 2

    out_bytes = jnp.dtype(out_dtype).itemsize
    est = _vmem_estimate(block_m, in_dim, hidden, bottleneck, out_bytes, wbuf)
    vmem_limit = min(vmem_cap, max(32 * 1024 * 1024, int(est * 1.5)))

    flops = 2 * n * (in_dim * hidden + hidden * hidden + hidden * bottleneck)
    transcendentals = 2 * n * hidden  # two GELUs over the hidden dim
    bytes_accessed = (n * in_dim * 2
                      + 2 * (in_dim * hidden + hidden * hidden + hidden * bottleneck)
                      + 4 * (2 * hidden + bottleneck)
                      + n * bottleneck * out_bytes)

    grid = (pl.cdiv(n, block_m),)
    kernel = functools.partial(_dino_head_kernel, gelu_fn=gelu_fn)
    return pl.pallas_call(
        kernel,
        out_shape=jax.ShapeDtypeStruct((n, bottleneck), out_dtype),
        grid_spec=pltpu.PrefetchScalarGridSpec(
            num_scalar_prefetch=0,
            grid=grid,
            in_specs=[
                pl.BlockSpec((block_m, in_dim), lambda i: (i, 0)),  # x tile (bf16)
                resident((in_dim, hidden)),       # w1 bf16, VMEM-resident
                resident((1, hidden)),            # b1 f32
                resident((hidden, hidden)),       # w2
                resident((1, hidden)),            # b2
                resident((hidden, bottleneck)),   # w3
                resident((1, bottleneck)),        # b3
            ],
            out_specs=pl.BlockSpec((block_m, bottleneck), lambda i: (i, 0)),
        ),
        compiler_params=pltpu.CompilerParams(
            dimension_semantics=("parallel",),
            vmem_limit_bytes=vmem_limit,
        ),
        cost_estimate=pl.CostEstimate(
            flops=flops,
            transcendentals=transcendentals,
            bytes_accessed=bytes_accessed,
        ),
    )


def dino_head_forward(x, params, *, block_m=512, out_dtype=None, gelu="tanh"):
    """x: (N, in_dim). params: (in, out)-transposed weights (bf16) / biases (f32)."""
    n, in_dim = x.shape
    hidden = params["w1"].shape[1]
    bottleneck = params["w3"].shape[1]
    out_dtype = x.dtype if out_dtype is None else out_dtype
    out_bytes = jnp.dtype(out_dtype).itemsize
    gelu_fn = _gelu_tanh if gelu == "tanh" else _gelu_erf

    vmem_cap = _device_vmem_capacity()

    # Batch tile: multiple of 8 sublanes, no larger than the (rounded-up) batch,
    # shrunk until the resident-weight footprint fits the device's VMEM.
    block_m = _round_up(max(8, min(block_m, _round_up(n, 8))), 8)
    while (block_m > 8 and
           _vmem_estimate(block_m, in_dim, hidden, bottleneck, out_bytes, 1) * 1.25
           > vmem_cap):
        block_m = max(8, _round_up(block_m // 2, 8))

    # Casts are no-ops when params are already stored in bf16/f32 (init_params).
    args = (
        x.astype(jnp.bfloat16),
        params["w1"].astype(jnp.bfloat16), params["b1"].astype(jnp.float32),
        params["w2"].astype(jnp.bfloat16), params["b2"].astype(jnp.float32),
        params["w3"].astype(jnp.bfloat16), params["b3"].astype(jnp.float32),
    )

    try:
        call = _build_call(n, block_m, in_dim, hidden, bottleneck, out_dtype,
                           gelu_fn, True, vmem_cap)
        return call(*args)
    except Exception as e:  # narrowed below to pipeline_mode rejection only
        msg = str(e)
        if not any(tok in msg for tok in ("pipeline_mode", "Buffered",
                                          "buffer_count")):
            raise  # genuine lowering/VMEM error: fail loudly, don't retry
        # Buffered(1) unsupported -> weights become double-buffered; shrink
        # block_m until that configuration still fits VMEM (matters on v7x).
        bm = block_m
        while (bm > 8 and
               _vmem_estimate(bm, in_dim, hidden, bottleneck, out_bytes, 2) * 1.25
               > vmem_cap):
            bm = max(8, _round_up(bm // 2, 8))
        call = _build_call(n, bm, in_dim, hidden, bottleneck, out_dtype,
                           gelu_fn, False, vmem_cap)
        return call(*args)


def init_params(key, in_dim, hidden_dim, bottleneck_dim):
    """Deterministic synthetic params: weights pre-transposed to (in, out) and
    pre-cast to bf16 once (no per-forward HBM-sized convert); biases f32."""
    k1, k2, k3, k4, k5, k6 = jax.random.split(key, 6)
    s1 = 1.0 / jnp.sqrt(in_dim)
    s2 = 1.0 / jnp.sqrt(hidden_dim)
    return {
        "w1": (jax.random.normal(k1, (in_dim, hidden_dim), jnp.float32) * s1
               ).astype(jnp.bfloat16),
        "b1": jax.random.normal(k2, (1, hidden_dim), jnp.float32) * 0.01,
        "w2": (jax.random.normal(k3, (hidden_dim, hidden_dim), jnp.float32) * s2
               ).astype(jnp.bfloat16),
        "b2": jax.random.normal(k4, (1, hidden_dim), jnp.float32) * 0.01,
        "w3": (jax.random.normal(k5, (hidden_dim, bottleneck_dim), jnp.float32) * s2
               ).astype(jnp.bfloat16),
        "b3": jax.random.normal(k6, (1, bottleneck_dim), jnp.float32) * 0.01,
    }
    # NOTE: self.last_layer (bottleneck -> out_dim, bias=False) is defined in
    # __init__ but never applied in forward(), so it is intentionally omitted.


def reference_forward(x, p, *, match_kernel_precision=False, gelu="tanh"):
    gelu_fn = _gelu_tanh if gelu == "tanh" else _gelu_erf
    if match_kernel_precision:
        def dot(a, b):
            return jnp.dot(a.astype(jnp.bfloat16), b.astype(jnp.bfloat16),
                           preferred_element_type=jnp.float32)
    else:
        def dot(a, b):
            return jnp.dot(a.astype(jnp.float32), b.astype(jnp.float32))
    h = gelu_fn(dot(x, p["w1"]) + p["b1"].astype(jnp.float32))
    h = gelu_fn(dot(h, p["w2"]) + p["b2"].astype(jnp.float32))
    return dot(h, p["w3"]) + p["b3"].astype(jnp.float32)


if __name__ == "__main__":
    # Small, module-consistent shapes. N=20 with block_m=8 gives grid=(3,) with a
    # clipped boundary block, exercising the pad-free ragged-batch path.
    key = jax.random.PRNGKey(0)
    kx, kp = jax.random.split(key)
    N, IN_DIM, HIDDEN, BOTTLENECK = 20, 32, 64, 16

    x = jax.random.normal(kx, (N, IN_DIM), jnp.float32)
    params = init_params(kp, IN_DIM, HIDDEN, BOTTLENECK)

    out = dino_head_forward(x, params, block_m=8)
    out = jax.block_until_ready(out)

    ref_matched = reference_forward(x, params, match_kernel_precision=True,
                                    gelu="tanh")
    ref_exact = reference_forward(x, params, match_kernel_precision=False,
                                  gelu="erf")

    assert out.shape == (N, BOTTLENECK)
    assert out.dtype == x.dtype
    assert bool(jnp.all(jnp.isfinite(out)))
    assert jnp.allclose(out, ref_matched, atol=3e-3, rtol=3e-3), \
        "mismatch vs precision-matched reference"
    assert jnp.allclose(out, ref_exact, atol=7e-2, rtol=7e-2), \
        "mismatch vs f32 exact-GELU reference"

    print("KERNEL_OK")
</pallas_src>

<mosaic_0001>
module attributes {stable_mosaic.version = 11 : i64} {
  func.func @_dino_head_kernel(%arg0: i32, %arg1: memref<8x32xbf16, #tpu.memory_space<vmem>>, %arg2: memref<32x64xbf16, #tpu.memory_space<vmem>>, %arg3: memref<1x64xf32, #tpu.memory_space<vmem>>, %arg4: memref<64x64xbf16, #tpu.memory_space<vmem>>, %arg5: memref<1x64xf32, #tpu.memory_space<vmem>>, %arg6: memref<64x16xbf16, #tpu.memory_space<vmem>>, %arg7: memref<1x16xf32, #tpu.memory_space<vmem>>, %arg8: memref<8x16xf32, #tpu.memory_space<vmem>>) attributes {dimension_semantics = [#tpu.dimension_semantics<parallel>], iteration_bounds = array<i64: 3>, scalar_prefetch = 0 : i64, scratch_operands = 0 : i64, tpu.core_type = #tpu.core_type<tc>, window_params = [{transform_indices = @transform_0, window_bounds = array<i64: 8, 32>}, {pipeline_mode = #tpu.pipeline_mode<synchronous>, transform_indices = @transform_1, window_bounds = array<i64: 32, 64>}, {pipeline_mode = #tpu.pipeline_mode<synchronous>, transform_indices = @transform_2, window_bounds = array<i64: 1, 64>}, {pipeline_mode = #tpu.pipeline_mode<synchronous>, transform_indices = @transform_3, window_bounds = array<i64: 64, 64>}, {pipeline_mode = #tpu.pipeline_mode<synchronous>, transform_indices = @transform_4, window_bounds = array<i64: 1, 64>}, {pipeline_mode = #tpu.pipeline_mode<synchronous>, transform_indices = @transform_5, window_bounds = array<i64: 64, 16>}, {pipeline_mode = #tpu.pipeline_mode<synchronous>, transform_indices = @transform_6, window_bounds = array<i64: 1, 16>}, {transform_indices = @transform_7, window_bounds = array<i64: 8, 16>}]} {
    %c0 = arith.constant 0 : index
    %c0_0 = arith.constant 0 : index
    %0 = vector.load %arg1[%c0, %c0_0] : memref<8x32xbf16, #tpu.memory_space<vmem>>, vector<8x32xbf16>
    %c0_1 = arith.constant 0 : index
    %c0_2 = arith.constant 0 : index
    %1 = vector.load %arg2[%c0_1, %c0_2] : memref<32x64xbf16, #tpu.memory_space<vmem>>, vector<32x64xbf16>
    %cst = arith.constant dense<0.000000e+00> : vector<8x64xf32>
    %2 = tpu.matmul %0, %1, %cst {dimension_numbers = #tpu.dot_dimension_numbers<[1], [0], [0], [1], [0, 0, 1, 1], [], []>} : vector<8x32xbf16>, vector<32x64xbf16>, vector<8x64xf32> -> vector<8x64xf32>
    %c0_3 = arith.constant 0 : index
    %c0_4 = arith.constant 0 : index
    %3 = vector.load %arg3[%c0_3, %c0_4] : memref<1x64xf32, #tpu.memory_space<vmem>>, vector<1x64xf32>
    %4 = vector.broadcast %3 : vector<1x64xf32> to vector<8x64xf32>
    %5 = arith.addf %2, %4 : vector<8x64xf32>
    %cst_5 = arith.constant 4.471500e-02 : f32
    %6 = vector.broadcast %cst_5 : f32 to vector<8x64xf32>
    %7 = arith.mulf %6, %5 : vector<8x64xf32>
    %8 = arith.mulf %7, %5 : vector<8x64xf32>
    %9 = arith.mulf %8, %5 : vector<8x64xf32>
    %10 = arith.addf %5, %9 : vector<8x64xf32>
    %cst_6 = arith.constant 0.797884583 : f32
    %11 = vector.broadcast %cst_6 : f32 to vector<8x64xf32>
    %12 = arith.mulf %11, %10 : vector<8x64xf32>
    %cst_7 = arith.constant 5.000000e-01 : f32
    %13 = vector.broadcast %cst_7 : f32 to vector<8x64xf32>
    %14 = arith.mulf %13, %5 : vector<8x64xf32>
    %15 = math.tanh %12 : vector<8x64xf32>
    %cst_8 = arith.constant 1.000000e+00 : f32
    %16 = vector.broadcast %cst_8 : f32 to vector<8x64xf32>
    %17 = arith.addf %16, %15 : vector<8x64xf32>
    %18 = arith.mulf %14, %17 : vector<8x64xf32>
    %19 = arith.truncf %18 : vector<8x64xf32> to vector<8x64xbf16>
    %c0_9 = arith.constant 0 : index
    %c0_10 = arith.constant 0 : index
    %20 = vector.load %arg4[%c0_9, %c0_10] : memref<64x64xbf16, #tpu.memory_space<vmem>>, vector<64x64xbf16>
    %cst_11 = arith.constant dense<0.000000e+00> : vector<8x64xf32>
    %21 = tpu.matmul %19, %20, %cst_11 {dimension_numbers = #tpu.dot_dimension_numbers<[1], [0], [0], [1], [0, 0, 1, 1], [], []>} : vector<8x64xbf16>, vector<64x64xbf16>, vector<8x64xf32> -> vector<8x64xf32>
    %c0_12 = arith.constant 0 : index
    %c0_13 = arith.constant 0 : index
    %22 = vector.load %arg5[%c0_12, %c0_13] : memref<1x64xf32, #tpu.memory_space<vmem>>, vector<1x64xf32>
    %23 = vector.broadcast %22 : vector<1x64xf32> to vector<8x64xf32>
    %24 = arith.addf %21, %23 : vector<8x64xf32>
    %cst_14 = arith.constant 4.471500e-02 : f32
    %25 = vector.broadcast %cst_14 : f32 to vector<8x64xf32>
    %26 = arith.mulf %25, %24 : vector<8x64xf32>
    %27 = arith.mulf %26, %24 : vector<8x64xf32>
    %28 = arith.mulf %27, %24 : vector<8x64xf32>
    %29 = arith.addf %24, %28 : vector<8x64xf32>
    %cst_15 = arith.constant 0.797884583 : f32
    %30 = vector.broadcast %cst_15 : f32 to vector<8x64xf32>
    %31 = arith.mulf %30, %29 : vector<8x64xf32>
    %cst_16 = arith.constant 5.000000e-01 : f32
    %32 = vector.broadcast %cst_16 : f32 to vector<8x64xf32>
    %33 = arith.mulf %32, %24 : vector<8x64xf32>
    %34 = math.tanh %31 : vector<8x64xf32>
    %cst_17 = arith.constant 1.000000e+00 : f32
    %35 = vector.broadcast %cst_17 : f32 to vector<8x64xf32>
    %36 = arith.addf %35, %34 : vector<8x64xf32>
    %37 = arith.mulf %33, %36 : vector<8x64xf32>
    %38 = arith.truncf %37 : vector<8x64xf32> to vector<8x64xbf16>
    %c0_18 = arith.constant 0 : index
    %c0_19 = arith.constant 0 : index
    %39 = vector.load %arg6[%c0_18, %c0_19] : memref<64x16xbf16, #tpu.memory_space<vmem>>, vector<64x16xbf16>
    %cst_20 = arith.constant dense<0.000000e+00> : vector<8x16xf32>
    %40 = tpu.matmul %38, %39, %cst_20 {dimension_numbers = #tpu.dot_dimension_numbers<[1], [0], [0], [1], [0, 0, 1, 1], [], []>} : vector<8x64xbf16>, vector<64x16xbf16>, vector<8x16xf32> -> vector<8x16xf32>
    %c0_21 = arith.constant 0 : index
    %c0_22 = arith.constant 0 : index
    %41 = vector.load %arg7[%c0_21, %c0_22] : memref<1x16xf32, #tpu.memory_space<vmem>>, vector<1x16xf32>
    %42 = vector.broadcast %41 : vector<1x16xf32> to vector<8x16xf32>
    %43 = arith.addf %40, %42 : vector<8x16xf32>
    %c0_23 = arith.constant 0 : index
    %c0_24 = arith.constant 0 : index
    %44 = vector.load %arg8[%c0_23, %c0_24] : memref<8x16xf32, #tpu.memory_space<vmem>>, vector<8x16xf32>
    tpu.vector_store %arg8[%c0_23, %c0_24], %43 {strides = array<i32>} : memref<8x16xf32, #tpu.memory_space<vmem>>, vector<8x16xf32>,
    return
  }
  func.func @transform_0(%arg0: i32) -> (i32, i32) {
    %c0_i32 = arith.constant 0 : i32
    %c0_i32_0 = arith.constant 0 : i32
    return %arg0, %c0_i32 : i32, i32
  }
  func.func @transform_1(%arg0: i32) -> (i32, i32) {
    %c0_i32 = arith.constant 0 : i32
    %c0_i32_0 = arith.constant 0 : i32
    %c0_i32_1 = arith.constant 0 : i32
    return %c0_i32, %c0_i32_0 : i32, i32
  }
  func.func @transform_2(%arg0: i32) -> (i32, i32) {
    %c0_i32 = arith.constant 0 : i32
    %c0_i32_0 = arith.constant 0 : i32
    %c0_i32_1 = arith.constant 0 : i32
    return %c0_i32, %c0_i32_0 : i32, i32
  }
  func.func @transform_3(%arg0: i32) -> (i32, i32) {
    %c0_i32 = arith.constant 0 : i32
    %c0_i32_0 = arith.constant 0 : i32
    %c0_i32_1 = arith.constant 0 : i32
    return %c0_i32, %c0_i32_0 : i32, i32
  }
  func.func @transform_4(%arg0: i32) -> (i32, i32) {
    %c0_i32 = arith.constant 0 : i32
    %c0_i32_0 = arith.constant 0 : i32
    %c0_i32_1 = arith.constant 0 : i32
    return %c0_i32, %c0_i32_0 : i32, i32
  }
  func.func @transform_5(%arg0: i32) -> (i32, i32) {
    %c0_i32 = arith.constant 0 : i32
    %c0_i32_0 = arith.constant 0 : i32
    %c0_i32_1 = arith.constant 0 : i32
    return %c0_i32, %c0_i32_0 : i32, i32
  }
  func.func @transform_6(%arg0: i32) -> (i32, i32) {
    %c0_i32 = arith.constant 0 : i32
    %c0_i32_0 = arith.constant 0 : i32
    %c0_i32_1 = arith.constant 0 : i32
    return %c0_i32, %c0_i32_0 : i32, i32
  }
  func.func @transform_7(%arg0: i32) -> (i32, i32) {
    %c0_i32 = arith.constant 0 : i32
    %c0_i32_0 = arith.constant 0 : i32
    return %arg0, %c0_i32 : i32, i32
  }
}

</mosaic_0001>

<bundles_post_ra>
// kernel: tpu_custom_call.1
= control target key start
LH: loop header
LB: loop body
LE: loop exit
PB: predicated region body
PF: predicated region fallthrough
CT: control target
= control target key end

     0   :  { %12 = vsyncpa [#allocation3], 0  ;;  %s998_s0 = inlined_call_operand.hbm [shape: bf16[20,32], index: 0, kind: input, shape index: {}]   ;;  %s999_s1 = inlined_call_operand.vmem [shape: bf16[32,64], index: 1, kind: input, shape index: {}]   ;;  %s1000_s2 = inlined_call_operand.vmem [shape: f32[1,64], index: 2, kind: input, shape index: {}]   ;;  %s1001_s3 = inlined_call_operand.vmem [shape: bf16[64,64], index: 3, kind: input, shape index: {}]   ;;  %s1002_s4 = inlined_call_operand.vmem [shape: f32[1,64], index: 4, kind: input, shape index: {}]   ;;  %s1003_s5 = inlined_call_operand.vmem [shape: bf16[64,16], index: 5, kind: input, shape index: {}]   ;;  %s1004_s6 = inlined_call_operand.vmem [shape: f32[1,16], index: 6, kind: input, shape index: {}]   ;;  %s1005_s7 = inlined_call_operand.vmem [shape: f32[20,16], index: 7, kind: output, shape index: {}]  }
   0x1   :  { %14 = vsyncpa [#allocation3 + $0x1], 0  ;;  %s850_s24 = smov 0   ;;  %s852_s25 = smov 0  }
   0x2   :  { %s854_s26 = smov 0   ;;  %s856_s27 = smov 0  }
   0x3 LB: > { %s869_s28 = sadd.s32 4294967295, %s805_s27   ;;  %s872_s29 = sadd.s32 1, %s805_s27   ;;  %s805_s27 = sphi %s856_s27, %s1013_s27   ;;  %s801_s26 = sphi %s854_s26, %s1012_s26   ;;  %s797_s25 = sphi %s852_s25, %s1011_s25   ;;  %s793_s24 = sphi %s850_s24, %s1010_s24  }
   0x4   : > { %s24_s30 = ssub.s32 %s805_s27, %s872_s29  ;;  %s27_s8 = sadd.s32 1, %s801_s26 }
   0x5   : > { %p25_p0 = scmp.eq.s32.totalorder %s24_s30, 0  ;;  %p34_p1 = scmp.ne.s32.totalorder %s801_s26, %s797_s25 }
   0x6   : > { %p35_p2 = scmp.eq.s32.totalorder %s805_s27, 0  ;;  %p40_p3 = scmp.ne.s32.totalorder %s797_s25, %s793_s24 }
   0x7   : > { %s882_s9 = scalar_select %p25_p0, %s801_s26, %s27_s8  }
   0x8   : > { %p36_p4 = por %p35_p2, %p34_p1  ;;  %p41_p5 = scmp.eq.s32.totalorder %s869_s28, 0 }
   0x9   : > { %p692_p6 = scmp.lt.s32.totalorder %s805_s27, 3  ;;  %s234_s11 = sand.u32 1, %s801_s26  }
   0xa   : > { %p886_p7 = por %p41_p5, %p40_p3  ;;  %s618_s12 = sshll.u32 %s234_s11, 2 }
   0xb   : > { %s619_s13 = sshll.u32 %s805_s27, 6  ;;  %s238_s17 = scalar_lea.vmem [#allocation2], %s618_s12 }
   0xc   : > { %s895_s16 = scalar_lea.hbm %s998_s0, %s619_s13  ;;  %s245_s18 = sshll.u32 %s238_s17, 4  ;;  %s897_s18 = int_to_ptr.vmem [resolvable:$true] %s245_s18 }
   0xd   : > { %p899_p8 = pnand %p692_p6, %p36_p4  ;;  %s235_s20 = scalar_lea.sflag [#allocation3], %s234_s11 }
   0xe   : > { %s741_s21 = scalar_lea.hbm %s895_s16, 64  ;;  %s746_s24 = scalar_lea.hbm %s998_s0, 192 }
   0xf   : > { %p742_p11 = scmp.ne.s32.totalorder %s895_s16, %s741_s21  ;;  %p743_p12 = pneg %p899_p8 }
  0x10   : > { %p747_p1 = scmp.lt.u32.totalorder %s895_s16, %s998_s0  ;;  %p748_p2 = scmp.lt.u32.totalorder %s746_s24, %s741_s21 }
  0x11   : > { %p744_p13 = pnand %p743_p12, %p742_p11  ;;  %p750_p4 = scmp.lt.u32.totalorder %s741_s21, %s895_s16 }
  0x12   : > { %p749_p3 = por %p748_p2, %p747_p1 }
  0x13   : > { %p745_p0 = pneg %p744_p13 }
  0x14   : > { %p751_p5 = por %p750_p4, %p749_p3 }
  0x16   : > { %p752_p6 = pnand %p751_p5, %p745_p0 }
  0x18   : > { %755 = shalt.err (!%p752_p6)
}
  0x19   : > { %s756_s11 = scalar_lea.vmem %s897_s18, 64  ;;  %s807_s12 = smov [#allocation2]  }
  0x1a   : > { %p757_p11 = scmp.ne.s32.totalorder %s897_s18, %s756_s11  ;;  %s761_s13 = sshll.u32 %s807_s12, 4  ;;  %s762_s13 = int_to_ptr.vmem [resolvable:$false] %s761_s13 }
  0x1b   : > { %s763_s14 = scalar_lea.vmem %s762_s13, 128  ;;  %p764_p10 = scmp.lt.s32.totalorder %s897_s18, %s762_s13 }
  0x1c   : > { %p759_p13 = pnand %p757_p11, %p743_p12  ;;  %p765_p1 = scmp.lt.s32.totalorder %s763_s14, %s756_s11 }
  0x1e   : > { %p760_p9 = pneg %p759_p13  ;;  %p766_p2 = por %p765_p1, %p764_p10 }
  0x20   : > { %p767_p3 = pnand %p766_p2, %p760_p9 }
  0x22   : > { %770 = shalt.err (!%p767_p3)
}
  0x23   : > { %691 = dma.hbm_to_vmem [thread:$0]  (!%p899_p8), %s895_s16, 64, %s897_s18, %s235_s20  }
  0x24   : > { %p1008_p0 = scmp.lt.s32.totalorder %s805_s27, 4  ;;  %p1009_p4 = scmp.ge.s32.totalorder %s805_s27, 1 }
  0x26   : > { %p251_p12 = pnand %p1009_p4, %p1008_p0 }
  0x27   : > { %s256_s15 = sand.u32 (!%p251_p12), 1, %s797_s25  }
  0x28   : > { %254 = sbr.rel (%p251_p12) target bundleno = 755 (0x2f3), region = 48  ;;  %s621_s17 = sshll.u32 (!%p251_p12), %s256_s15, 2 }
  0x29   : > { %s257_s21 = scalar_lea.sflag (!%p251_p12), [#allocation3], %s256_s15  ;;  %s260_s22 = scalar_lea.vmem (!%p251_p12), [#allocation2], %s621_s17 }
  0x2f   : > { %788 = dma.done.wait (%p886_p7), %s257_s21, 64  }
  0x30   : > { %790 = vsyncadd (%p886_p7), %s257_s21, 4294967232  ;;  %v808_v0 = vmov 0.0   ;;  %vm809_vm0 = vmmov 0   ;;  %v727_v1 = vld [vmem:[%s999_s1] sm:$0xff]   ;;  %v728_v2 = vld [vmem:[%s999_s1 + $0x8] sm:$0xff]   ;;  %vm319_vm1 = vcmask 261120  }
  0x31   : > { %654 = vmatprep.subr.bf16.mxu0 %v808_v0  ;;  %658 = vmatprep.mubr.msk.bf16.mxu0 %vm809_vm0, %v808_v0  ;;  %v295_v3 = vld [vmem:[%s260_s22] sm:$0xf]  ;;  %v730_v5 = vld [vmem:[%s1001_s3 + $0x8] sm:$0xff]   ;;  %v731_v6 = vld [vmem:[%s1001_s3 + $0x10] sm:$0xff]   ;;  %vm412_vm2 = vcmask 523264   ;;  %p290_p7 = scmp.lt.s32.totalorder %s869_s28, 2 }
  0x32   : > { %662 = vmatprep.subr.bf16.mxu1 %v808_v0  ;;  %670 = vmatprep.mubr.msk.bf16.mxu1 %vm809_vm0, %v808_v0  ;;  %v729_v4 = vld [vmem:[%s1001_s3] sm:$0xff]   ;;  %v732_v7 = vld [vmem:[%s1001_s3 + $0x18] sm:$0xff]   ;;  %v734_v25 = vld [vmem:[%s1003_s5 + $0x8] sm:$0xff]   ;;  %vm548_vm3 = vcmask 130048  }
  0x33   : > { %655 = vmatpush3.bf16.msra.mxu0 %v727_v1  ;;  %663 = vmatpush3.bf16.msra.mxu1 %v729_v4  ;;  %v623_v8 = vld [vmem:[%s1000_s2] ss:$0 sm:$0xff]  ;;  %v735_v26 = vld [vmem:[%s1003_s5 + $0x10] sm:$0xff]   ;;  %v736_v27 = vld [vmem:[%s1003_s5 + $0x18] sm:$0xff]   ;;  %s1015_s28 = smov (!%p290_p7, %s869_s28), 2 }
  0x34   : > { %656 = vmatprep.subr.bf16.mxu0 %v808_v0  ;;  %664 = vmatprep.subr.bf16.mxu1 %v808_v0  ;;  %v733_v24 = vld [vmem:[%s1003_s5] sm:$0xff]   ;;  %s622_s23 = sshll.u32 %s1015_s28, 3 }
  0x35   : > { %v627_v28 = vld [vmem:[%s1002_s4] ss:$0 sm:$0xff]  ;;  %s293_s12 = scalar_lea.vmem %s1005_s7, %s622_s23 }
  0x36   : > { %v633_v44 = vld [vmem:[%s1004_s6] ss:$0 sm:$0xff] }
  0x37   : > { %657 = vmatpush3.bf16.msra.mxu0 %v728_v2  ;;  %665 = vmatpush3.bf16.msra.mxu1 %v730_v5 }
  0x38   : > { %674 = vmatprep.subr.bf16.mxu0 %v808_v0  ;;  %666 = vmatprep.subr.bf16.mxu1 %v808_v0 }
  0x3a   : > { %659 = vmatmul.mubr.msk.bf16.vlgmr.msra.gmra.mrb[0].mxu0 %vm319_vm1, %v295_v3 }
  0x3b   : > { %682 = vmatprep.mubr.msk.bf16.mxu0 %vm809_vm0, %v808_v0  ;;  %667 = vmatpush3.bf16.msra.mxu1 %v731_v6 }
  0x3c   : > { %668 = vmatprep.subr.bf16.mxu1 %v808_v0  ;;  %675 = vmatpush3.bf16.msra.mxu0 %v733_v24 }
  0x3d   : > { %676 = vmatprep.subr.bf16.mxu0 %v808_v0 }
  0x3f   : > { %669 = vmatpush3.bf16.msra.mxu1 %v732_v7 }
  0x40   : > { %677 = vmatpush3.bf16.msra.mxu0 %v734_v25 }
  0x41   : > { %678 = vmatprep.subr.bf16.mxu0 %v808_v0 }
  0x44   : > { %679 = vmatpush3.bf16.msra.mxu0 %v735_v26 }
  0x45   : > { %680 = vmatprep.subr.bf16.mxu0 %v808_v0 }
  0x48   : > { %681 = vmatpush3.bf16.msra.mxu0 %v736_v27 }
 0x10d   : > { %v357_v9 = vpop.f32.mrb[0].mxu0 }
 0x10e   : > { %v358_v10 = vadd.f32 %v623_v8, %v357_v9  ;;  %v660_v11 = vpop.f32.mrb[1].mxu0 }
 0x10f   : > { %v360_v12 = vpop.f32.mrb[2].mxu0 }
 0x110   : > { %v363_v13 = vmul.f32 0.044715, %v358_v10  ;;  %v661_v14 = vpop.f32.mrb[3].mxu0  ;;  %v368_v20 = vmul.f32 0.5, %v358_v10 }
 0x112   : > { %v364_v15 = vmul.f32 %v363_v13, %v358_v10 }
 0x114   : > { %v365_v16 = vmul.f32 %v364_v15, %v358_v10 }
 0x116   : > { %v366_v17 = vadd.f32 %v365_v16, %v358_v10 }
 0x118   : > { %v367_v18 = vmul.f32 0.7978846, %v366_v17 }
 0x11a   : > { %737 = vtanh.f32 %v367_v18 }
 0x124   : > { %v738_v19 = vpop.eup %737 }
 0x125   : > { %v370_v21 = vadd.f32 1.0, %v738_v19 }
 0x127   : > { %v371_v22 = vmul.f32 %v370_v21, %v368_v20 }
 0x129   : > { %v372_v23 = vpack.c.bf16 %v371_v22, %v371_v22 }
 0x12b   : > { %671 = vmatmul.mubr.msk.bf16.vlgmr.msra.gmra.mrb[0].mxu1 %vm412_vm2, %v372_v23 }
 0x1fe   : > { %v450_v29 = vpop.f32.mrb[0].mxu1 }
 0x1ff   : > { %v451_v30 = vadd.f32 %v627_v28, %v450_v29  ;;  %v672_v31 = vpop.f32.mrb[1].mxu1 }
 0x200   : > { %v453_v32 = vpop.f32.mrb[2].mxu1 }
 0x201   : > { %v456_v33 = vmul.f32 0.044715, %v451_v30  ;;  %v673_v34 = vpop.f32.mrb[3].mxu1  ;;  %v461_v40 = vmul.f32 0.5, %v451_v30 }
 0x203   : > { %v457_v35 = vmul.f32 %v456_v33, %v451_v30 }
 0x205   : > { %v458_v36 = vmul.f32 %v457_v35, %v451_v30 }
 0x207   : > { %v459_v37 = vadd.f32 %v458_v36, %v451_v30 }
 0x209   : > { %v460_v38 = vmul.f32 0.7978846, %v459_v37 }
 0x20b   : > { %739 = vtanh.f32 %v460_v38 }
 0x215   : > { %v740_v39 = vpop.eup %739 }
 0x216   : > { %v463_v41 = vadd.f32 1.0, %v740_v39 }
 0x218   : > { %v464_v42 = vmul.f32 %v463_v41, %v461_v40 }
 0x21a   : > { %v465_v43 = vpack.c.bf16 %v464_v42, %v464_v42 }
 0x21c   : > { %683 = vmatmul.mubr.msk.bf16.vlgmr.msra.gmra.mrb[4].mxu0 %vm412_vm2, %v465_v43 }
 0x2ef   : > { %v542_v45 = vpop.f32.mrb[4].mxu0 }
 0x2f0   : > { %v543_v46 = vadd.f32 %v633_v44, %v542_v45  ;;  %v684_v47 = vpop.f32.mrb[5].mxu0 }
 0x2f1   : > { %v545_v48 = vpop.f32.mrb[6].mxu0 }
 0x2f2   : > { %549 = vst.msk [vmem:[%s293_s12] sm:$0xff] %vm548_vm3, %v543_v46  ;;  %v685_v49 = vpop.f32.mrb[7].mxu0 }
 0x2f3 PF: > { %p17_p8 = scmp.ge.s32.totalorder %s872_s29, 5   ;;  %s1010_s24 = smov %s797_s25 }
 0x2f4   : > { %s1011_s25 = smov %s801_s26  ;;  %s1012_s26 = smov %s882_s9 }
 0x2f5   : > { %s1013_s27 = smov %s872_s29  ;;  %19 = sbr.rel (!%p17_p8) target bundleno = 3 (0x3), region = 88 }
 0x2fc   :  { %569 = vsyncpa [#allocation3], 1 }
 0x2fd   :  { %571 = vsyncpa [#allocation3 + $0x1], 1 }

</bundles_post_ra>
